<compile_context>
chip_gen: v5e
topology: v5e:2x2
jax: 0.10.0
libtpu: 0.0.40
codegen_flags: <defaults>
</compile_context>

<pallas_src>
import functools

import jax
import jax.numpy as jnp
from jax import lax
from jax.experimental import pallas as pl
from jax.experimental.pallas import tpu as pltpu

EPS = 1e-5

_VMEM = pl.BlockSpec(memory_space=pltpu.MemorySpace.VMEM)


# ----------------------------------------------------------------------------
# Fused kernel: synthetic stem (conv-as-matmul, conv-bias/BN folded into w0,
# Swish, GAP-as-matmul) followed by the `myfc` head (Linear+BN folded, Swish,
# Linear).  All dropouts are identity at inference; 5-branch average elided.
# ----------------------------------------------------------------------------
def _effnet_mmc_kernel(patch_ref, w0_ref, gap_ref, w1_ref, w2_ref, w3_ref,
                       bias_ref, out_ref, *, d1, d2, np_out):
    # ---- stem: im2col matmul; conv bias + BN live in w0 (bias-column trick)
    h = jnp.dot(patch_ref[...], w0_ref[...],
                preferred_element_type=jnp.float32)
    h = h * jax.nn.sigmoid(h)                                   # Swish (f32)

    # ---- global average pool as an MXU matmul ----
    # gap_ref is (8, B*P) of exact 0/1 indicators; rows >= B are zero, so
    # `feat` comes out batch-padded to 8 rows.  The 1/P normalization was
    # folded into w1 at the wrapper, so this is a pure (exact) row-sum.
    feat = jnp.dot(gap_ref[...], h.astype(jnp.bfloat16),
                   preferred_element_type=jnp.float32)          # (8, in_ch)

    # ---- static slices of the concatenated bias vector (free) ----
    b1 = bias_ref[:, 0:d1]
    b2 = bias_ref[:, d1:d1 + d2]
    b3 = bias_ref[:, d1 + d2:d1 + d2 + np_out]

    # ---- myfc head (Linear+BN folded, Swish; Dropout == identity) ----
    h1 = jnp.dot(feat.astype(jnp.bfloat16), w1_ref[...],
                 preferred_element_type=jnp.float32) + b1
    h1 = h1 * jax.nn.sigmoid(h1)
    h2 = jnp.dot(h1.astype(jnp.bfloat16), w2_ref[...],
                 preferred_element_type=jnp.float32) + b2
    h2 = h2 * jax.nn.sigmoid(h2)
    # Final Linear; out_dim padded to 128 -> lane-dense (unmasked) store.
    out_ref[...] = jnp.dot(h2.astype(jnp.bfloat16), w3_ref[...],
                           preferred_element_type=jnp.float32) + b3


# ----------------------------------------------------------------------------
# Wrapper
# ----------------------------------------------------------------------------
def effnet_mmc_forward(patches_flat, gap_mat, w0, w1, w2, w3, bias_cat,
                       batch, out_dim):
    Bp = gap_mat.shape[0]          # padded batch rows (8)
    d1 = w1.shape[1]               # 512
    d2 = w2.shape[1]               # 128
    Np = w3.shape[1]               # padded output lanes (128)
    kernel = functools.partial(_effnet_mmc_kernel, d1=d1, d2=d2, np_out=Np)
    out = pl.pallas_call(
        kernel,
        out_shape=jax.ShapeDtypeStruct((Bp, Np), jnp.float32),
        in_specs=[_VMEM] * 7,
        out_specs=_VMEM,
    )(patches_flat, w0, gap_mat, w1, w2, w3, bias_cat)
    return out[:batch, :out_dim]


# ----------------------------------------------------------------------------
# Glue helpers (plain JAX)
# ----------------------------------------------------------------------------
def im2col(x, kh, kw, stride, pad):
    # x: (B, C, H, W) NCHW  ->  (B, P, K)
    patches = lax.conv_general_dilated_patches(
        x, filter_shape=(kh, kw), window_strides=(stride, stride),
        padding=((pad, pad), (pad, pad)),
        dimension_numbers=("NCHW", "OIHW", "NCHW"))
    B, K, Ho, Wo = patches.shape
    return patches.reshape(B, K, Ho * Wo).transpose(0, 2, 1)


def bn_fold(gamma, beta, mean, var):
    scale = gamma / jnp.sqrt(var + EPS)
    shift = beta - mean * scale
    return scale.reshape(1, -1), shift.reshape(1, -1)


def fold_linear_bn(w, b, scale, shift):
    # (x @ w + b) * scale + shift  ==  x @ (w * scale) + (b * scale + shift)
    return w * scale, b * scale + shift


# ----------------------------------------------------------------------------
# Main
# ----------------------------------------------------------------------------
if __name__ == "__main__":
    B, Cin, H, W = 2, 3, 16, 16
    in_ch = 64                    # backbone feature width (classifier.in_features)
    n_meta_dim = (512, 128)
    out_dim = 8
    kh = kw = 3
    stride, pad = 2, 1
    K = Cin * kh * kw             # 27
    KP = 32                       # contraction dim padded (27 data + 1 bias + pad)
    BP = 8                        # batch padded to f32 sublane granularity
    NP = 128                      # out_dim padded to lane width

    ks = jax.random.split(jax.random.PRNGKey(0), 12)
    x = jax.random.normal(ks[0], (B, Cin, H, W), jnp.float32)

    # synthetic stem parameters
    # TODO(synk): the real geffnet EfficientNet backbone is an external
    #             dependency; replaced by one conv+BN+Swish+GAP stage that
    #             still yields a (B, in_ch) feature like `self.enet(x)`.
    w_stem = 0.1 * jax.random.normal(ks[1], (K, in_ch), jnp.float32)
    b_stem = 0.01 * jax.random.normal(ks[2], (1, in_ch), jnp.float32)
    s_stem, t_stem = bn_fold(
        1.0 + 0.1 * jax.random.normal(ks[3], (in_ch,), jnp.float32),
        0.1 * jax.random.normal(ks[4], (in_ch,), jnp.float32),
        0.1 * jax.random.normal(ks[5], (in_ch,), jnp.float32),
        jnp.abs(jax.random.normal(ks[6], (in_ch,), jnp.float32)) + 0.5,
    )

    def lin_init(key, fan_in, fan_out):
        k1, k2 = jax.random.split(key)
        bound = 1.0 / jnp.sqrt(jnp.float32(fan_in))
        w = jax.random.uniform(k1, (fan_in, fan_out), jnp.float32, -bound, bound)
        b = jax.random.uniform(k2, (1, fan_out), jnp.float32, -bound, bound)
        return w, b

    def bn_rand(key, n):
        k1, k2, k3, k4 = jax.random.split(key, 4)
        return bn_fold(1.0 + 0.1 * jax.random.normal(k1, (n,), jnp.float32),
                       0.1 * jax.random.normal(k2, (n,), jnp.float32),
                       0.1 * jax.random.normal(k3, (n,), jnp.float32),
                       jnp.abs(jax.random.normal(k4, (n,), jnp.float32)) + 0.5)

    w1, b1 = lin_init(ks[7], in_ch, n_meta_dim[0])
    s1, t1 = bn_rand(ks[8], n_meta_dim[0])
    w2, b2 = lin_init(ks[9], n_meta_dim[0], n_meta_dim[1])
    s2, t2 = bn_rand(ks[10], n_meta_dim[1])
    w3, b3 = lin_init(ks[11], n_meta_dim[1], out_dim)

    # ---- wrapper-level constant folding + padding ----
    patches = im2col(x, kh, kw, stride, pad)                 # (B, P, K)
    P = patches.shape[1]                                     # 64
    patches_flat = patches.reshape(B * P, K)
    # bias column (index K) = 1.0; remaining columns zero   -> (B*P, 32)
    patches_flat = jnp.pad(patches_flat, ((0, 0), (0, KP - K)))
    patches_flat = patches_flat.at[:, K].set(1.0)

    # stem: fold conv bias + BN into w0; write folded bias into row K of w0
    w0 = w_stem * s_stem                                     # (K, in_ch)
    b0 = b_stem * s_stem + t_stem                            # (1, in_ch)
    w0 = jnp.pad(w0, ((0, KP - K), (0, 0)))                  # (32, in_ch)
    w0 = w0.at[K, :].set(b0[0])

    # GAP as a matmul: (BP, B*P) indicator matrix (exact in bf16);
    # the 1/P normalization is folded into w1 below.
    row_ids = jnp.repeat(jnp.arange(B), P)                   # (B*P,)
    gap_mat = (jnp.arange(BP)[:, None] == row_ids[None, :]).astype(jnp.float32)

    # head: fold Linear+BN pairs; fold 1/P into w1; pad final out_dim -> NP
    w1f, b1f = fold_linear_bn(w1, b1, s1, t1)
    w1f = w1f * (1.0 / P)
    w2f, b2f = fold_linear_bn(w2, b2, s2, t2)
    w3p = jnp.pad(w3, ((0, 0), (0, NP - out_dim)))
    b3p = jnp.pad(b3, ((0, 0), (0, NP - out_dim)))

    # one concatenated f32 bias vector (static in-kernel slices are free)
    bias_cat = jnp.concatenate([b1f, b2f, b3p], axis=1)      # (1, 768)

    # bf16 matmul operands (f32 accumulation inside the kernel); biases f32
    bf = jnp.bfloat16
    out = effnet_mmc_forward(
        patches_flat.astype(bf), gap_mat.astype(bf),
        w0.astype(bf), w1f.astype(bf), w2f.astype(bf), w3p.astype(bf),
        bias_cat,
        batch=B, out_dim=out_dim)
    out = jax.block_until_ready(out)

    # ---- pure-JAX f32 reference (original, unfolded parameters) ----
    h_ref = jnp.einsum("bpk,kc->bpc", patches, w_stem) + b_stem
    h_ref = h_ref * s_stem + t_stem
    h_ref = h_ref * jax.nn.sigmoid(h_ref)
    feat_ref = jnp.mean(h_ref, axis=1)

    def myfc_ref(v):
        a = v @ w1 + b1
        a = a * s1 + t1
        a = a * jax.nn.sigmoid(a)
        a = a @ w2 + b2
        a = a * s2 + t2
        a = a * jax.nn.sigmoid(a)
        return a @ w3 + b3

    # 5-branch dropout average == identity at inference
    ref = myfc_ref(feat_ref)

    assert out.shape == (B, out_dim)
    assert bool(jnp.all(jnp.isfinite(out)))
    assert bool(jnp.allclose(out, ref, rtol=5e-2, atol=5e-2)), (
        "Pallas output diverges from reference")
    print("KERNEL_OK")
</pallas_src>

<mosaic_0001>
module attributes {stable_mosaic.version = 11 : i64} {
  func.func @_effnet_mmc_kernel(%arg0: memref<128x32xbf16, #tpu.memory_space<vmem>>, %arg1: memref<32x64xbf16, #tpu.memory_space<vmem>>, %arg2: memref<8x128xbf16, #tpu.memory_space<vmem>>, %arg3: memref<64x512xbf16, #tpu.memory_space<vmem>>, %arg4: memref<512x128xbf16, #tpu.memory_space<vmem>>, %arg5: memref<128x128xbf16, #tpu.memory_space<vmem>>, %arg6: memref<1x768xf32, #tpu.memory_space<vmem>>, %arg7: memref<8x128xf32, #tpu.memory_space<vmem>>) attributes {dimension_semantics = [], scalar_prefetch = 0 : i64, scratch_operands = 0 : i64, tpu.core_type = #tpu.core_type<tc>} {
    %c0 = arith.constant 0 : index
    %c0_0 = arith.constant 0 : index
    %0 = vector.load %arg0[%c0, %c0_0] : memref<128x32xbf16, #tpu.memory_space<vmem>>, vector<128x32xbf16>
    %c0_1 = arith.constant 0 : index
    %c0_2 = arith.constant 0 : index
    %1 = vector.load %arg1[%c0_1, %c0_2] : memref<32x64xbf16, #tpu.memory_space<vmem>>, vector<32x64xbf16>
    %cst = arith.constant dense<0.000000e+00> : vector<128x64xf32>
    %2 = tpu.matmul %0, %1, %cst {dimension_numbers = #tpu.dot_dimension_numbers<[1], [0], [0], [1], [0, 0, 1, 1], [], []>} : vector<128x32xbf16>, vector<32x64xbf16>, vector<128x64xf32> -> vector<128x64xf32>
    %3 = arith.negf %2 : vector<128x64xf32>
    %4 = math.exp %3 : vector<128x64xf32>
    %cst_3 = arith.constant 1.000000e+00 : f32
    %5 = vector.broadcast %cst_3 : f32 to vector<128x64xf32>
    %6 = arith.addf %5, %4 : vector<128x64xf32>
    %7 = arith.divf %5, %6 : vector<128x64xf32>
    %8 = arith.mulf %2, %7 : vector<128x64xf32>
    %c0_4 = arith.constant 0 : index
    %c0_5 = arith.constant 0 : index
    %9 = vector.load %arg2[%c0_4, %c0_5] : memref<8x128xbf16, #tpu.memory_space<vmem>>, vector<8x128xbf16>
    %10 = arith.truncf %8 : vector<128x64xf32> to vector<128x64xbf16>
    %cst_6 = arith.constant dense<0.000000e+00> : vector<8x64xf32>
    %11 = tpu.matmul %9, %10, %cst_6 {dimension_numbers = #tpu.dot_dimension_numbers<[1], [0], [0], [1], [0, 0, 1, 1], [], []>} : vector<8x128xbf16>, vector<128x64xbf16>, vector<8x64xf32> -> vector<8x64xf32>
    %c0_7 = arith.constant 0 : index
    %c0_8 = arith.constant 0 : index
    %12 = vector.load %arg6[%c0_7, %c0_8] : memref<1x768xf32, #tpu.memory_space<vmem>>, vector<1x512xf32>
    %c0_9 = arith.constant 0 : index
    %c512 = arith.constant 512 : index
    %13 = vector.load %arg6[%c0_9, %c512] : memref<1x768xf32, #tpu.memory_space<vmem>>, vector<1x128xf32>
    %c0_10 = arith.constant 0 : index
    %c640 = arith.constant 640 : index
    %14 = vector.load %arg6[%c0_10, %c640] : memref<1x768xf32, #tpu.memory_space<vmem>>, vector<1x128xf32>
    %15 = arith.truncf %11 : vector<8x64xf32> to vector<8x64xbf16>
    %c0_11 = arith.constant 0 : index
    %c0_12 = arith.constant 0 : index
    %16 = vector.load %arg3[%c0_11, %c0_12] : memref<64x512xbf16, #tpu.memory_space<vmem>>, vector<64x512xbf16>
    %cst_13 = arith.constant dense<0.000000e+00> : vector<8x512xf32>
    %17 = tpu.matmul %15, %16, %cst_13 {dimension_numbers = #tpu.dot_dimension_numbers<[1], [0], [0], [1], [0, 0, 1, 1], [], []>} : vector<8x64xbf16>, vector<64x512xbf16>, vector<8x512xf32> -> vector<8x512xf32>
    %18 = vector.broadcast %12 : vector<1x512xf32> to vector<8x512xf32>
    %19 = arith.addf %17, %18 : vector<8x512xf32>
    %20 = arith.negf %19 : vector<8x512xf32>
    %21 = math.exp %20 : vector<8x512xf32>
    %cst_14 = arith.constant 1.000000e+00 : f32
    %22 = vector.broadcast %cst_14 : f32 to vector<8x512xf32>
    %23 = arith.addf %22, %21 : vector<8x512xf32>
    %24 = arith.divf %22, %23 : vector<8x512xf32>
    %25 = arith.mulf %19, %24 : vector<8x512xf32>
    %26 = arith.truncf %25 : vector<8x512xf32> to vector<8x512xbf16>
    %c0_15 = arith.constant 0 : index
    %c0_16 = arith.constant 0 : index
    %27 = vector.load %arg4[%c0_15, %c0_16] : memref<512x128xbf16, #tpu.memory_space<vmem>>, vector<512x128xbf16>
    %cst_17 = arith.constant dense<0.000000e+00> : vector<8x128xf32>
    %28 = tpu.matmul %26, %27, %cst_17 {dimension_numbers = #tpu.dot_dimension_numbers<[1], [0], [0], [1], [0, 0, 1, 1], [], []>} : vector<8x512xbf16>, vector<512x128xbf16>, vector<8x128xf32> -> vector<8x128xf32>
    %29 = vector.broadcast %13 : vector<1x128xf32> to vector<8x128xf32>
    %30 = arith.addf %28, %29 : vector<8x128xf32>
    %31 = arith.negf %30 : vector<8x128xf32>
    %32 = math.exp %31 : vector<8x128xf32>
    %cst_18 = arith.constant 1.000000e+00 : f32
    %33 = vector.broadcast %cst_18 : f32 to vector<8x128xf32>
    %34 = arith.addf %33, %32 : vector<8x128xf32>
    %35 = arith.divf %33, %34 : vector<8x128xf32>
    %36 = arith.mulf %30, %35 : vector<8x128xf32>
    %37 = arith.truncf %36 : vector<8x128xf32> to vector<8x128xbf16>
    %c0_19 = arith.constant 0 : index
    %c0_20 = arith.constant 0 : index
    %38 = vector.load %arg5[%c0_19, %c0_20] : memref<128x128xbf16, #tpu.memory_space<vmem>>, vector<128x128xbf16>
    %cst_21 = arith.constant dense<0.000000e+00> : vector<8x128xf32>
    %39 = tpu.matmul %37, %38, %cst_21 {dimension_numbers = #tpu.dot_dimension_numbers<[1], [0], [0], [1], [0, 0, 1, 1], [], []>} : vector<8x128xbf16>, vector<128x128xbf16>, vector<8x128xf32> -> vector<8x128xf32>
    %40 = vector.broadcast %14 : vector<1x128xf32> to vector<8x128xf32>
    %41 = arith.addf %39, %40 : vector<8x128xf32>
    %c0_22 = arith.constant 0 : index
    %c0_23 = arith.constant 0 : index
    %42 = vector.load %arg7[%c0_22, %c0_23] : memref<8x128xf32, #tpu.memory_space<vmem>>, vector<8x128xf32>
    tpu.vector_store %arg7[%c0_22, %c0_23], %41 {strides = array<i32>} : memref<8x128xf32, #tpu.memory_space<vmem>>, vector<8x128xf32>,
    return
  }
}

</mosaic_0001>

<bundles_post_ra>
// kernel: tpu_custom_call.1
= control target key start
LH: loop header
LB: loop body
LE: loop exit
PB: predicated region body
PF: predicated region fallthrough
CT: control target
= control target key end

     0   :  { %12 = vsyncpa [#allocation3], 0  ;;  %s2190_s0 = inlined_call_operand.vmem [shape: bf16[128,32], index: 0, kind: input, shape index: {}]   ;;  %s2191_s1 = inlined_call_operand.vmem [shape: bf16[32,64], index: 1, kind: input, shape index: {}]   ;;  %s2192_s2 = inlined_call_operand.vmem [shape: bf16[8,128], index: 2, kind: input, shape index: {}]   ;;  %s2193_s3 = inlined_call_operand.hbm [shape: bf16[64,512], index: 3, kind: input, shape index: {}]   ;;  %s2194_s4 = inlined_call_operand.hbm [shape: bf16[512,128], index: 4, kind: input, shape index: {}]   ;;  %s2195_s5 = inlined_call_operand.vmem [shape: bf16[128,128], index: 5, kind: input, shape index: {}]   ;;  %s2196_s6 = inlined_call_operand.hbm [shape: f32[1,768], index: 6, kind: input, shape index: {}]   ;;  %s2197_s7 = inlined_call_operand.hbm [shape: f32[8,128], index: 7, kind: output, shape index: {}]  }
   0x1   :  { %13 = vsyncpa [#allocation6], 0  ;;  %s38_s26 = sshll.u32 %s2194_s4, 4  ;;  %s39_s26 = int_to_ptr.hbm [resolvable:$true] %s38_s26 }
   0x2   :  { %14 = vsyncpa [#allocation4], 0  ;;  %s1802_s27 = smov [#allocation5]   ;;  %s25_s8 = sshll.u32 %s2193_s3, 4  ;;  %s26_s8 = int_to_ptr.hbm [resolvable:$true] %s25_s8 }
   0x3   :  { %s40_s28 = sshll.u32 %s1802_s27, 4  ;;  %s1803_s9 = smov 64   ;;  %s41_s28 = int_to_ptr.vmem [resolvable:$true] %s40_s28 }
   0x4   :  { %s1804_s10 = smov 4   ;;  %s1805_s11 = smov [#allocation2]  }
   0x5   :  { %46 = dma.hbm_to_vmem [thread:$0]  %s39_s26, 4096, %s41_s28, [#allocation6], %s1803_s9, %s1803_s9, %s1804_s10  }
   0x6   :  { %s27_s12 = sshll.u32 %s1805_s11, 4  ;;  %s1806_s13 = smov 256   ;;  %s28_s12 = int_to_ptr.vmem [resolvable:$true] %s27_s12 }
   0x7   :  { %s1807_s14 = smov 16   ;;  %s54_s16 = sshll.u32 %s2196_s6, 4  ;;  %s55_s16 = int_to_ptr.hbm [resolvable:$true] %s54_s16 }
   0x8   :  { %33 = dma.hbm_to_vmem [thread:$0]  %s26_s8, 2048, %s28_s12, [#allocation3], %s1806_s13, %s1806_s13, %s1807_s14  }
   0x9   :  { %s1808_s17 = smov [#allocation7]  }
   0xa   :  { %s56_s18 = sshll.u32 %s1808_s17, 4  ;;  %s57_s18 = int_to_ptr.vmem [resolvable:$true] %s56_s18 }
   0xb   :  { %59 = dma.hbm_to_vmem [thread:$0]  %s55_s16, 96, %s57_s18, [#allocation6]  }
   0xc   :  { %1796 = dma.done.wait [#allocation3], 2048  }
   0xd   :  { %1797 = vsyncadd [#allocation3], 4294965248 }
   0xe   :  { %1798 = dma.done.wait [#allocation6], 4192  }
   0xf   :  { %1799 = vsyncadd [#allocation6], 4294963104  ;;  %v1547_v0 = vld [vmem:[%s2191_s1 + $0x8] sm:$0xff]  ;;  %v1546_v1 = vld [vmem:[%s2191_s1] sm:$0xff]  ;;  %vm145_vm0 = vcmask 261120   ;;  %s1230_s28 = sshll.u32 %s2197_s7, 4  ;;  %s1231_s28 = int_to_ptr.hbm [resolvable:$true] %s1230_s28 }
  0x10   :  { %176 = vmatpush.bf16.msra.mxu0 %v1547_v0  ;;  %1604 = vmatpush.bf16.msra.mxu3 %v1547_v0  ;;  %v1538_v2 = vld [vmem:[%s2190_s0] sm:$0xff]  ;;  %v1539_v3 = vld [vmem:[%s2190_s0 + $0x8] sm:$0xff]  ;;  %v1545_v4 = vld [vmem:[%s2190_s0 + $0x38] sm:$0xff] }
  0x11   :  { %v1540_v5 = vld [vmem:[%s2190_s0 + $0x10] sm:$0xff]  ;;  %v1541_v6 = vld [vmem:[%s2190_s0 + $0x18] sm:$0xff]  ;;  %v1542_v7 = vld [vmem:[%s2190_s0 + $0x20] sm:$0xff] }
  0x12   :  { %v1543_v8 = vld [vmem:[%s2190_s0 + $0x28] sm:$0xff]  ;;  %v1544_v9 = vld [vmem:[%s2190_s0 + $0x30] sm:$0xff] }
  0x14   :  { %177 = vmatpush.bf16.msra.mxu0 %v1546_v1  ;;  %1605 = vmatpush.bf16.msra.mxu3 %v1546_v1 }
  0x17   :  { %1281 = vmatmul.msk.bf16.vlgmr.msra.gmra.mxu0 %vm145_vm0, %v1538_v2  ;;  %1288 = vmatmul.msk.bf16.vlgmr.msra.gmra.mxu3 %vm145_vm0, %v1545_v4 }
  0x27   :  { %1282 = vmatmul.msk.bf16.gmra.mxu0 %vm145_vm0, %v1539_v3 }
  0x37   :  { %1283 = vmatmul.msk.bf16.gmra.mxu0 %vm145_vm0, %v1540_v5 }
  0x47   :  { %1284 = vmatmul.msk.bf16.gmra.mxu0 %vm145_vm0, %v1541_v6 }
  0x57   :  { %1285 = vmatmul.msk.bf16.gmra.mxu0 %vm145_vm0, %v1542_v7 }
  0x67   :  { %1286 = vmatmul.msk.bf16.gmra.mxu0 %vm145_vm0, %v1543_v8 }
  0x77   :  { %1287 = vmatmul.msk.bf16.gmra.mxu0 %vm145_vm0, %v1544_v9 }
  0x94   :  { %v179_v10 = vpop.f32.mrf.mxu0 }
  0x95   :  { %v1289_v11 = vmul.f32 -1.442695, %v179_v10 }
  0x97   :  { %1616 = vpow2.f32 %v1289_v11 }
  0x9a   :  { %v1903_v27 = vpop.f32.mrf.mxu3 }
  0x9b   :  { %v1303_v50 = vmul.f32 -1.442695, %v1903_v27 }
  0x9c   :  { %v181_v12 = vpop.f32.mrf.mxu0 }
  0x9d   :  { %v1617_v13 = vpop.eup %1616  ;;  %v1290_v14 = vmul.f32 -1.442695, %v181_v12 }
  0x9e   :  { %v267_v15 = vadd.f32 1.0, %v1617_v13 }
  0x9f   :  { %1618 = vpow2.f32 %v1290_v14 }
  0xa0   :  { %1620 = vrcp.f32 %v267_v15  ;;  %v292_v32 = vand.u32 2147483647, %v267_v15  ;;  %v294_v33 = vand.u32 2147483648, %v267_v15  ;;  %vm288_vm2 = vweird.f32 %v267_v15 }
  0xa2   :  { %vm293_vm5 = vcmp.eq.f32.partialorder %v292_v32, 8.507059e+37  ;;  %v295_v40 = vor.u32 1.1754944e-38, %v294_v33  ;;  %v1917_v46 = vpop.f32.mrf.mxu3 }
  0xa3   :  { %v1304_v51 = vmul.f32 -1.442695, %v1917_v46 }
  0xa4   :  { %v1897_v16 = vpop.f32.mrf.mxu0 }
  0xa5   :  { %v1619_v17 = vpop.eup %1618  ;;  %v1291_v18 = vmul.f32 -1.442695, %v1897_v16 }
  0xa6   :  { %v1621_v19 = vpop.eup %1620  ;;  %v268_v20 = vadd.f32 1.0, %v1619_v17 }
  0xa7   :  { %v284_v21 = vmul.f32 %v1621_v19, %v267_v15  ;;  %1622 = vpow2.f32 %v1291_v18  ;;  %vm289_vm1 = vweird.f32 %v1621_v19 }
  0xa8   :  { %1624 = vrcp.f32 %v268_v20  ;;  %v309_v35 = vand.u32 2147483648, %v268_v20  ;;  %vm1908_vm3 = vmor %vm288_vm2, %vm289_vm1  ;;  %v307_v39 = vand.u32 2147483647, %v268_v20  ;;  %vm303_vm6 = vweird.f32 %v268_v20 }
  0xa9   :  { %v285_v22 = vsub.f32 1.0, %v284_v21 }
  0xaa   :  { %v310_v44 = vor.u32 1.1754944e-38, %v309_v35  ;;  %vm308_vm8 = vcmp.eq.f32.partialorder %v307_v39, 8.507059e+37 }
  0xab   :  { %v286_v23 = vmul.f32 %v1621_v19, %v285_v22 }
  0xac   :  { %v1900_v24 = vpop.f32.mrf.mxu0 }
  0xad   :  { %v1623_v25 = vpop.eup %1622  ;;  %v1292_v26 = vmul.f32 -1.442695, %v1900_v24  ;;  %v287_v30 = vadd.f32 %v1621_v19, %v286_v23 }
  0xae   :  { %v1625_v28 = vpop.eup %1624  ;;  %v1905_v29 = vadd.f32 1.0, %v1623_v25 }
  0xaf   :  { %v299_v31 = vmul.f32 %v1625_v28, %v268_v20  ;;  %1626 = vpow2.f32 %v1292_v26  ;;  %v291_v37 = vsel %vm1908_vm3, %v1621_v19, %v287_v30  ;;  %vm304_vm4 = vweird.f32 %v1625_v28 }
  0xb0   :  { %1628 = vrcp.f32 %v1905_v29  ;;  %v296_v48 = vsel %vm293_vm5, %v295_v40, %v291_v37  ;;  %vm305_vm7 = vmor %vm303_vm6, %vm304_vm4  ;;  %vm318_vm10 = vweird.f32 %v1905_v29  ;;  %v324_v5 = vand.u32 2147483648, %v1905_v29 }
  0xb1   :  { %v300_v34 = vsub.f32 1.0, %v299_v31  ;;  %v1922_v55 = vmul.f32 %v296_v48, %v179_v10  ;;  %v322_v8 = vand.u32 2147483647, %v1905_v29 }
  0xb2   :  { %v325_v18 = vor.u32 1.1754944e-38, %v324_v5 }
  0xb3   :  { %v301_v38 = vmul.f32 %v1625_v28, %v300_v34  ;;  %vm323_vm14 = vcmp.eq.f32.partialorder %v322_v8, 8.507059e+37 }
  0xb4   :  { %v1914_v41 = vpop.f32.mrf.mxu0 }
  0xb5   :  { %v1627_v42 = vpop.eup %1626  ;;  %v302_v43 = vadd.f32 %v1625_v28, %v301_v38  ;;  %v1293_v45 = vmul.f32 -1.442695, %v1914_v41 }
  0xb6   :  { %v1629_v47 = vpop.eup %1628  ;;  %v270_v49 = vadd.f32 1.0, %v1627_v42 }
  0xb7   :  { %v306_v52 = vsel %vm305_vm7, %v1625_v28, %v302_v43  ;;  %v314_v53 = vmul.f32 %v1629_v47, %v1905_v29  ;;  %1630 = vpow2.f32 %v1293_v45  ;;  %vm319_vm9 = vweird.f32 %v1629_v47 }
  0xb8   :  { %v311_v54 = vsel %vm308_vm8, %v310_v44, %v306_v52  ;;  %1632 = vrcp.f32 %v270_v49  ;;  %v337_v9 = vand.u32 2147483647, %v270_v49  ;;  %v339_v10 = vand.u32 2147483648, %v270_v49  ;;  %vm1941_vm11 = vmor %vm318_vm10, %vm319_vm9 }
  0xb9   :  { %v1924_v56 = vmul.f32 %v311_v54, %v181_v12  ;;  %v315_v57 = vsub.f32 1.0, %v314_v53  ;;  %1634 = vpow2.f32 %v1303_v50  ;;  %vm333_vm13 = vweird.f32 %v270_v49 }
  0xba   :  { %1636 = vpow2.f32 %v1304_v51  ;;  %vm338_vm0 = vcmp.eq.f32.partialorder %v337_v9, 8.507059e+37  ;;  %v340_v22 = vor.u32 1.1754944e-38, %v339_v10 }
  0xbb   :  { %v540_v58 = vpack.c.bf16 %v1924_v56, %v1922_v55  ;;  %v316_v59 = vmul.f32 %v1629_v47, %v315_v57  ;;  %v1347_v55 = vld [vmem:[#allocation2 + $0x48] sm:$0xf]  ;;  %v1559_v56 = vld [vmem:[#allocation2 + $0x54] sm:$0xf0] }
  0xbc   :  { %v1928_v60 = vpop.f32.mrf.mxu0 }
  0xbd   :  { %v1631_v61 = vpop.eup %1630  ;;  %v1294_v62 = vmul.f32 -1.442695, %v1928_v60  ;;  %v317_v4 = vadd.f32 %v1629_v47, %v316_v59 }
  0xbe   :  { %v1633_v63 = vpop.eup %1632  ;;  %v1931_v0 = vadd.f32 1.0, %v1631_v61 }
  0xbf   :  { %v1635_v1 = vpop.eup %1634  ;;  %v329_v2 = vmul.f32 %v1633_v63, %v270_v49  ;;  %1638 = vpow2.f32 %v1294_v62  ;;  %vm334_vm12 = vweird.f32 %v1633_v63  ;;  %v321_v14 = vsel %vm1941_vm11, %v1629_v47, %v317_v4 }
  0xc0   :  { %v1637_v3 = vpop.eup %1636  ;;  %1640 = vrcp.f32 %v1931_v0  ;;  %v1936_v7 = vadd.f32 1.0, %v1635_v1  ;;  %vm335_vm15 = vmor %vm333_vm13, %vm334_vm12  ;;  %v326_v25 = vsel %vm323_vm14, %v325_v18, %v321_v14  ;;  %v352_v33 = vand.u32 2147483647, %v1931_v0 }
  0xc1   :  { %v330_v6 = vsub.f32 1.0, %v329_v2  ;;  %v1939_v11 = vadd.f32 1.0, %v1637_v3  ;;  %v1966_v35 = vmul.f32 %v326_v25, %v1897_v16  ;;  %vm348_vm1 = vweird.f32 %v1931_v0 }
  0xc2   :  { %1642 = vrcp.f32 %v1936_v7  ;;  %vm1978_vm2 = vcmp.eq.f32.partialorder %v352_v33, 8.507059e+37  ;;  %vm498_vm3 = vweird.f32 %v1936_v7  ;;  %v504_v45 = vand.u32 2147483648, %v1936_v7 }
  0xc3   :  { %v331_v13 = vmul.f32 %v1633_v63, %v330_v6  ;;  %1644 = vrcp.f32 %v1939_v11  ;;  %v502_v50 = vand.u32 2147483647, %v1936_v7  ;;  %vm513_vm7 = vweird.f32 %v1939_v11 }
  0xc4   :  { %v1948_v15 = vpop.f32.mrf.mxu0  ;;  %v517_v4 = vand.u32 2147483647, %v1939_v11  ;;  %v519_v5 = vand.u32 2147483648, %v1939_v11 }
  0xc5   :  { %v1639_v17 = vpop.eup %1638  ;;  %v332_v19 = vadd.f32 %v1633_v63, %v331_v13  ;;  %v1295_v20 = vmul.f32 -1.442695, %v1948_v15  ;;  %vm2006_vm10 = vcmp.eq.f32.partialorder %v502_v50, 8.507059e+37 }
  0xc6   :  { %v1952_v21 = vpop.eup %1640  ;;  %v1954_v23 = vadd.f32 1.0, %v1639_v17 }
  0xc7   :  { %v336_v26 = vsel %vm335_vm15, %v1633_v63, %v332_v19  ;;  %v344_v28 = vmul.f32 %v1952_v21, %v1931_v0  ;;  %1646 = vpow2.f32 %v1295_v20  ;;  %vm349_vm5 = vweird.f32 %v1952_v21 }
  0xc8   :  { %v341_v29 = vsel %vm338_vm0, %v340_v22, %v336_v26  ;;  %1648 = vrcp.f32 %v1954_v23  ;;  %v1643_v30 = vpop.eup %1642  ;;  %v369_v54 = vand.u32 2147483648, %v1954_v23  ;;  %v367_v61 = vand.u32 2147483647, %v1954_v23  ;;  %vm2002_vm9 = vmor %vm348_vm1, %vm349_vm5 }
  0xc9   :  { %v1960_v31 = vmul.f32 %v341_v29, %v1900_v24  ;;  %v345_v32 = vsub.f32 1.0, %v344_v28  ;;  %v1963_v34 = vpop.eup %1644  ;;  %v494_v36 = vmul.f32 %v1643_v30, %v1936_v7  ;;  %v354_v24 = vand.u32 2147483648, %v1931_v0 }
  0xca   :  { %v509_v38 = vmul.f32 %v1963_v34, %v1939_v11  ;;  %vm499_vm4 = vweird.f32 %v1643_v30  ;;  %vm514_vm8 = vweird.f32 %v1963_v34  ;;  %v505_v63 = vor.u32 1.1754944e-38, %v504_v45 }
  0xcb   :  { %v346_v37 = vmul.f32 %v1952_v21, %v345_v32  ;;  %v495_v40 = vsub.f32 1.0, %v494_v36  ;;  %v541_v42 = vpack.c.bf16 %v1960_v31, %v1966_v35  ;;  %vm1993_vm6 = vmor %vm498_vm3, %vm499_vm4  ;;  %v355_v9 = vor.u32 1.1754944e-38, %v354_v24  ;;  %v1563_v31 = vld [vmem:[#allocation2 + $0x74] sm:$0xf0]  ;;  %v1561_v35 = vld [vmem:[#allocation2 + $0x6c] sm:$0xf] }
  0xcc   :  { %v1974_v39 = vpop.f32.mrf.mxu0  ;;  %v510_v51 = vsub.f32 1.0, %v509_v38  ;;  %vm2020_vm12 = vmor %vm513_vm7, %vm514_vm8  ;;  %vm363_vm13 = vweird.f32 %v1954_v23  ;;  %v370_v10 = vor.u32 1.1754944e-38, %v369_v54  ;;  %v520_v11 = vor.u32 1.1754944e-38, %v519_v5 }
  0xcd   :  { %v1647_v43 = vpop.eup %1646  ;;  %v1296_v44 = vmul.f32 -1.442695, %v1974_v39  ;;  %v496_v49 = vmul.f32 %v1643_v30, %v495_v40  ;;  %v347_v52 = vadd.f32 %v1952_v21, %v346_v37  ;;  %vm518_vm15 = vcmp.eq.f32.partialorder %v517_v4, 8.507059e+37 }
  0xce   :  { %v1649_v47 = vpop.eup %1648  ;;  %v1985_v48 = vadd.f32 1.0, %v1647_v43  ;;  %v511_v3 = vmul.f32 %v1963_v34, %v510_v51  ;;  %vm368_vm0 = vcmp.eq.f32.partialorder %v367_v61, 8.507059e+37 }
  0xcf   :  { %v359_v53 = vmul.f32 %v1649_v47, %v1954_v23  ;;  %1650 = vpow2.f32 %v1296_v44  ;;  %v497_v62 = vadd.f32 %v1643_v30, %v496_v49  ;;  %v351_v6 = vsel %vm2002_vm9, %v1952_v21, %v347_v52 }
  0xd0   :  { %1652 = vrcp.f32 %v1985_v48  ;;  %vm364_vm11 = vweird.f32 %v1649_v47  ;;  %v512_v13 = vadd.f32 %v1963_v34, %v511_v3  ;;  %v356_v21 = vsel %vm1978_vm2, %v355_v9, %v351_v6 }
  0xd1   :  { %v360_v59 = vsub.f32 1.0, %v359_v53  ;;  %v501_v0 = vsel %vm1993_vm6, %v1643_v30, %v497_v62  ;;  %vm365_vm14 = vmor %vm363_vm13, %vm364_vm11  ;;  %v2040_v30 = vmul.f32 %v356_v21, %v1914_v41  ;;  %v384_v45 = vand.u32 2147483648, %v1985_v48 }
  0xd2   :  { %v506_v18 = vsel %vm2006_vm10, %v505_v63, %v501_v0  ;;  %v516_v23 = vsel %vm2020_vm12, %v1963_v34, %v512_v13  ;;  %vm378_vm2 = vweird.f32 %v1985_v48 }
  0xd3   :  { %v361_v7 = vmul.f32 %v1649_v47, %v360_v59  ;;  %v537_v29 = vmul.f32 %v506_v18, %v1903_v27  ;;  %v521_v36 = vsel %vm518_vm15, %v520_v11, %v516_v23  ;;  %v385_v53 = vor.u32 1.1754944e-38, %v384_v45 }
  0xd4   :  { %v2025_v12 = vpop.f32.mrf.mxu0  ;;  %v538_v34 = vmul.f32 %v521_v36, %v1917_v46  ;;  %v382_v46 = vand.u32 2147483647, %v1985_v48 }
  0xd5   :  { %v1651_v14 = vpop.eup %1650  ;;  %v362_v17 = vadd.f32 %v1649_v47, %v361_v7  ;;  %v1297_v19 = vmul.f32 -1.442695, %v2025_v12 }
  0xd6   :  { %v1653_v20 = vpop.eup %1652  ;;  %v274_v22 = vadd.f32 1.0, %v1651_v14  ;;  %v547_v40 = vpack.c.bf16 %v538_v34, %v537_v29  ;;  %vm383_vm5 = vcmp.eq.f32.partialorder %v382_v46, 8.507059e+37 }
  0xd7   :  { %v366_v25 = vsel %vm365_vm14, %v1649_v47, %v362_v17  ;;  %v374_v26 = vmul.f32 %v1653_v20, %v1985_v48  ;;  %1654 = vpow2.f32 %v1297_v19  ;;  %vm379_vm1 = vweird.f32 %v1653_v20 }
  0xd8   :  { %v371_v28 = vsel %vm368_vm0, %v370_v10, %v366_v25  ;;  %1656 = vrcp.f32 %v274_v22  ;;  %548 = vmatpush.bf16.msra.mxu1 %v547_v40  ;;  %vm380_vm3 = vmor %vm378_vm2, %vm379_vm1  ;;  %v399_v49 = vand.u32 2147483648, %v274_v22  ;;  %v397_v52 = vand.u32 2147483647, %v274_v22 }
  0xd9   :  { %v2043_v32 = vmul.f32 %v371_v28, %v1928_v60  ;;  %v375_v33 = vsub.f32 1.0, %v374_v26  ;;  %vm393_vm6 = vweird.f32 %v274_v22 }
  0xda   :  { %v400_v63 = vor.u32 1.1754944e-38, %v399_v49  ;;  %vm398_vm8 = vcmp.eq.f32.partialorder %v397_v52, 8.507059e+37 }
  0xdb   :  { %v376_v37 = vmul.f32 %v1653_v20, %v375_v33  ;;  %v542_v38 = vpack.c.bf16 %v2043_v32, %v2040_v30  ;;  %v1363_v32 = vld [vmem:[#allocation2 + $0x68] sm:$0xf] }
  0xdc   :  { %v2048_v24 = vpop.f32.mrf.mxu0 }
  0xdd   :  { %v1655_v43 = vpop.eup %1654  ;;  %v1298_v27 = vmul.f32 -1.442695, %v2048_v24  ;;  %v377_v44 = vadd.f32 %v1653_v20, %v376_v37 }
  0xde   :  { %v1657_v16 = vpop.eup %1656  ;;  %v275_v41 = vadd.f32 1.0, %v1655_v43 }
  0xdf   :  { %v389_v60 = vmul.f32 %v1657_v16, %v274_v22  ;;  %1658 = vpow2.f32 %v1298_v27  ;;  %v381_v50 = vsel %vm380_vm3, %v1653_v20, %v377_v44  ;;  %vm394_vm4 = vweird.f32 %v1657_v16 }
  0xe0   :  { %1660 = vrcp.f32 %v275_v41  ;;  %v386_v62 = vsel %vm383_vm5, %v385_v53, %v381_v50  ;;  %vm395_vm7 = vmor %vm393_vm6, %vm394_vm4  ;;  %vm408_vm10 = vweird.f32 %v275_v41 }
  0xe1   :  { %v390_v47 = vsub.f32 1.0, %v389_v60  ;;  %v2057_v4 = vmul.f32 %v386_v62, %v1948_v15  ;;  %v414_v15 = vand.u32 2147483648, %v275_v41 }
  0xe3   :  { %v391_v51 = vmul.f32 %v1657_v16, %v390_v47  ;;  %v415_v22 = vor.u32 1.1754944e-38, %v414_v15 }
  0xe4   :  { %v2054_v54 = vpop.f32.mrf.mxu0 }
  0xe5   :  { %v1659_v57 = vpop.eup %1658  ;;  %v392_v59 = vadd.f32 %v1657_v16, %v391_v51  ;;  %v1299_v8 = vmul.f32 -1.442695, %v2054_v54 }
  0xe6   :  { %v1661_v61 = vpop.eup %1660  ;;  %v276_v1 = vadd.f32 1.0, %v1659_v57 }
  0xe7   :  { %v396_v48 = vsel %vm395_vm7, %v1657_v16, %v392_v59  ;;  %v404_v2 = vmul.f32 %v1661_v61, %v275_v41  ;;  %vm409_vm9 = vweird.f32 %v1661_v61 }
  0xe8   :  { %v401_v3 = vsel %vm398_vm8, %v400_v63, %v396_v48  ;;  %1662 = vrcp.f32 %v276_v1  ;;  %vm410_vm11 = vmor %vm408_vm10, %vm409_vm9  ;;  %v429_v19 = vand.u32 2147483648, %v276_v1  ;;  %v427_v21 = vand.u32 2147483647, %v276_v1 }
  0xe9   :  { %v2060_v5 = vmul.f32 %v401_v3, %v1974_v39  ;;  %v405_v6 = vsub.f32 1.0, %v404_v2  ;;  %v412_v39 = vand.u32 2147483647, %v275_v41  ;;  %vm423_vm14 = vweird.f32 %v276_v1 }
  0xea   :  { %v430_v36 = vor.u32 1.1754944e-38, %v429_v19  ;;  %vm428_vm0 = vcmp.eq.f32.partialorder %v427_v21, 8.507059e+37 }
  0xeb   :  { %v406_v7 = vmul.f32 %v1661_v61, %v405_v6  ;;  %v543_v0 = vpack.c.bf16 %v2060_v5, %v2057_v4  ;;  %vm413_vm13 = vcmp.eq.f32.partialorder %v412_v39, 8.507059e+37  ;;  %v1550_v4 = vld [vmem:[#allocation2 + $0xc] sm:$0xf0]  ;;  %v1548_v5 = vld [vmem:[#allocation2 + $0x4] sm:$0xf] }
  0xec   :  { %v2065_v9 = vpop.f32.mrf.mxu0 }
  0xed   :  { %v1300_v10 = vmul.f32 -1.442695, %v2065_v9  ;;  %v407_v14 = vadd.f32 %v1661_v61, %v406_v7 }
  0xee   :  { %v1663_v13 = vpop.eup %1662 }
  0xef   :  { %v419_v17 = vmul.f32 %v1663_v13, %v276_v1  ;;  %1664 = vpow2.f32 %v1300_v10  ;;  %v411_v11 = vsel %vm410_vm11, %v1661_v61, %v407_v14  ;;  %vm424_vm12 = vweird.f32 %v1663_v13 }
  0xf0   :  { %1666 = vpow2.f32 %v1299_v8  ;;  %v416_v33 = vsel %vm413_vm13, %v415_v22, %v411_v11  ;;  %vm425_vm15 = vmor %vm423_vm14, %vm424_vm12  ;;  %v1315_v22 = vld [vmem:[#allocation2 + $0x8] sm:$0xf] }
  0xf1   :  { %v420_v18 = vsub.f32 1.0, %v419_v17  ;;  %v2074_v43 = vmul.f32 %v416_v33, %v2025_v12 }
  0xf3   :  { %v421_v20 = vmul.f32 %v1663_v13, %v420_v18  ;;  %v1555_v18 = vld [vmem:[#allocation2 + $0x34] sm:$0xf0] }
  0xf4   :  { %v2068_v23 = vpop.f32.mrf.mxu0 }
  0xf5   :  { %v1665_v25 = vpop.eup %1664  ;;  %v422_v26 = vadd.f32 %v1663_v13, %v421_v20  ;;  %v1301_v28 = vmul.f32 -1.442695, %v2068_v23 }
  0xf6   :  { %v1667_v29 = vpop.eup %1666  ;;  %v2071_v40 = vadd.f32 1.0, %v1665_v25  ;;  %v1551_v25 = vld [vmem:[#allocation2 + $0x14] sm:$0xf0] }
  0xf7   :  { %v426_v34 = vsel %vm425_vm15, %v1663_v13, %v422_v26  ;;  %1668 = vpow2.f32 %v1301_v28  ;;  %v277_v16 = vadd.f32 1.0, %v1667_v29  ;;  %v1317_v28 = vld [vmem:[#allocation2 + $0x18] sm:$0xf0] }
  0xf8   :  { %v431_v37 = vsel %vm428_vm0, %v430_v36, %v426_v34  ;;  %1670 = vrcp.f32 %v2071_v40  ;;  %vm453_vm3 = vweird.f32 %v2071_v40  ;;  %v457_v15 = vand.u32 2147483647, %v2071_v40 }
  0xf9   :  { %v2077_v27 = vmul.f32 %v431_v37, %v2048_v24  ;;  %1672 = vrcp.f32 %v277_v16  ;;  %v442_v2 = vand.u32 2147483647, %v277_v16  ;;  %v444_v3 = vand.u32 2147483648, %v277_v16 }
  0xfa   :  { %v459_v39 = vand.u32 2147483648, %v2071_v40  ;;  %vm438_vm8 = vweird.f32 %v277_v16  ;;  %vm458_vm15 = vcmp.eq.f32.partialorder %v457_v15, 8.507059e+37 }
  0xfb   :  { %v544_v41 = vpack.c.bf16 %v2077_v27, %v2074_v43  ;;  %vm2101_vm9 = vcmp.eq.f32.partialorder %v442_v2, 8.507059e+37  ;;  %v445_v36 = vor.u32 1.1754944e-38, %v444_v3  ;;  %v1309_v43 = vld [vmem:[#allocation2 + $0x10] sm:$0xf0]  ;;  %v1348_v27 = vor.u32 %v1559_v56, %v1347_v55 }
  0xfc   :  { %v2082_v44 = vpop.f32.mrf.mxu0  ;;  %v460_v34 = vor.u32 1.1754944e-38, %v459_v39  ;;  %v1312_v30 = vor.u32 %v1548_v5, %v1309_v43  ;;  %v1331_v39 = vld [vmem:[#allocation2 + $0x28] sm:$0xf]  ;;  %v1583_v5 = vld [vmem:[#allocation5 + $0x98] sm:$0xff] }
  0xfd   :  { %v1669_v60 = vpop.eup %1668  ;;  %v1302_v45 = vmul.f32 -1.442695, %v2082_v44 }
  0xfe   :  { %v279_v46 = vadd.f32 1.0, %v1669_v60  ;;  %v1671_v12 = vpop.eup %1670 }
  0xff   :  { %1674 = vpow2.f32 %v1302_v45  ;;  %v2085_v47 = vpop.eup %1672  ;;  %v449_v49 = vmul.f32 %v1671_v12, %v2071_v40  ;;  %vm454_vm4 = vweird.f32 %v1671_v12 }
 0x100   :  { %1676 = vrcp.f32 %v279_v46  ;;  %v434_v51 = vmul.f32 %v2085_v47, %v277_v16  ;;  %vm439_vm2 = vweird.f32 %v2085_v47  ;;  %v474_v8 = vand.u32 2147483648, %v279_v46  ;;  %vm2108_vm10 = vmor %vm453_vm3, %vm454_vm4 }
 0x101   :  { %v450_v57 = vsub.f32 1.0, %v449_v49  ;;  %vm468_vm5 = vweird.f32 %v279_v46  ;;  %v472_v13 = vand.u32 2147483647, %v279_v46  ;;  %vm2114_vm11 = vmor %vm438_vm8, %vm439_vm2  ;;  %v1562_v49 = vld [vmem:[#allocation2 + $0x6c] sm:$0xf0] }
 0x102   :  { %v435_v61 = vsub.f32 1.0, %v434_v51  ;;  %v475_v26 = vor.u32 1.1754944e-38, %v474_v8  ;;  %v1325_v8 = vld [vmem:[#allocation2 + $0x30] sm:$0xf0] }
 0x103   :  { %v451_v63 = vmul.f32 %v1671_v12, %v450_v57  ;;  %vm473_vm12 = vcmp.eq.f32.partialorder %v472_v13, 8.507059e+37  ;;  %v1339_v57 = vld [vmem:[#allocation2 + $0x40] sm:$0xf] }
 0x104   :  { %v436_v48 = vmul.f32 %v2085_v47, %v435_v61 }
 0x105   :  { %v1675_v24 = vpop.eup %1674  ;;  %v452_v10 = vadd.f32 %v1671_v12, %v451_v63  ;;  %v1341_v63 = vld [vmem:[#allocation2 + $0x50] sm:$0xf0] }
 0x106   :  { %v1677_v50 = vpop.eup %1676  ;;  %v280_v52 = vadd.f32 1.0, %v1675_v24  ;;  %v437_v17 = vadd.f32 %v2085_v47, %v436_v48  ;;  %v1355_v24 = vld [vmem:[#allocation2 + $0x60] sm:$0xf] }
 0x107   :  { %v464_v53 = vmul.f32 %v1677_v50, %v279_v46  ;;  %vm469_vm1 = vweird.f32 %v1677_v50  ;;  %v456_v29 = vsel %vm2108_vm10, %v1671_v12, %v452_v10  ;;  %v1560_v12 = vld [vmem:[#allocation2 + $0x64] sm:$0xf] }
 0x108   :  { %1678 = vrcp.f32 %v280_v52  ;;  %vm2095_vm6 = vmor %vm468_vm5, %vm469_vm1  ;;  %v489_v19 = vand.u32 2147483648, %v280_v52  ;;  %v487_v21 = vand.u32 2147483647, %v280_v52  ;;  %vm483_vm13 = vweird.f32 %v280_v52 }
 0x109   :  { %v465_v59 = vsub.f32 1.0, %v464_v53  ;;  %v441_v16 = vsel %vm2114_vm11, %v2085_v47, %v437_v17  ;;  %v461_v45 = vsel %vm458_vm15, %v460_v34, %v456_v29  ;;  %v1357_v53 = vld [vmem:[#allocation2 + $0x70] sm:$0xf0]  ;;  %v1349_v17 = vld [vmem:[#allocation2 + $0x58] sm:$0xf0]  ;;  %v1316_v29 = vor.u32 %v1551_v25, %v1315_v22 }
 0x10a   :  { %v490_v40 = vor.u32 1.1754944e-38, %v489_v19  ;;  %vm488_vm0 = vcmp.eq.f32.partialorder %v487_v21, 8.507059e+37  ;;  %v446_v61 = vsel %vm2101_vm9, %v445_v36, %v441_v16  ;;  %v1360_v47 = vor.u32 %v1560_v12, %v1357_v53  ;;  %v1553_v19 = vld [vmem:[#allocation2 + $0x2c] sm:$0xf]  ;;  %v1571_v36 = vld [vmem:[#allocation5 + $0x38] sm:$0xff]  ;;  %v1570_v34 = vld [vmem:[#allocation5 + $0x30] sm:$0xff] }
 0x10b   :  { %v466_v62 = vmul.f32 %v1677_v50, %v465_v59  ;;  %v1558_v59 = vld [vmem:[#allocation2 + $0x4c] sm:$0xf0]  ;;  %vm670_vm1 = vcmask 523264   ;;  %v1564_v53 = vld [vmem:[#allocation5] sm:$0xff] }
 0x10c   :  { %v1340_v2 = vor.u32 %v1558_v59, %v1339_v57  ;;  %691 = vmatpush.bf16.msrb.mxu3 %v1360_v47  ;;  %v1566_v12 = vld [vmem:[#allocation5 + $0x10] sm:$0xff]  ;;  %v1575_v57 = vld [vmem:[#allocation5 + $0x58] sm:$0xff] }
 0x10d   :  { %v467_v6 = vadd.f32 %v1677_v50, %v466_v62  ;;  %v1556_v62 = vld [vmem:[#allocation2 + $0x44] sm:$0xf]  ;;  %v1587_v59 = vld [vmem:[#allocation5 + $0xb8] sm:$0xff]  ;;  %v1574_v47 = vld [vmem:[#allocation5 + $0x50] sm:$0xff] }
 0x10e   :  { %v1679_v1 = vpop.eup %1678  ;;  %v1344_v3 = vor.u32 %v1556_v62, %v1341_v63  ;;  %v1586_v62 = vld [vmem:[#allocation5 + $0xb0] sm:$0xff] }
 0x10f   :  { %v479_v7 = vmul.f32 %v1679_v1, %v280_v52  ;;  %v471_v11 = vsel %vm2095_vm6, %v1677_v50, %v467_v6  ;;  %vm484_vm7 = vweird.f32 %v1679_v1  ;;  %v1356_v52 = vor.u32 %v1562_v49, %v1355_v24  ;;  %v1554_v6 = vld [vmem:[#allocation2 + $0x2c] sm:$0xf0]  ;;  %v1567_v24 = vld [vmem:[#allocation5 + $0x18] sm:$0xff] }
 0x110   :  { %v476_v37 = vsel %vm473_vm12, %v475_v26, %v471_v11  ;;  %vm485_vm14 = vmor %vm483_vm13, %vm484_vm7  ;;  %692 = vmatpush.bf16.msrb.mxu3 %v1344_v3  ;;  %v1332_v11 = vor.u32 %v1555_v18, %v1331_v39  ;;  %v1549_v26 = vld [vmem:[#allocation2 + $0xc] sm:$0xf]  ;;  %v1578_v49 = vld [vmem:[#allocation5 + $0x70] sm:$0xff] }
 0x111   :  { %v480_v14 = vsub.f32 1.0, %v479_v7  ;;  %v535_v50 = vmul.f32 %v476_v37, %v2068_v23  ;;  %678 = vmatpush.bf16.msra.mxu2 %v1356_v52  ;;  %v1323_v23 = vld [vmem:[#allocation2 + $0x20] sm:$0xf]  ;;  %v1552_v7 = vld [vmem:[#allocation2 + $0x24] sm:$0xf]  ;;  %v1569_v37 = vld [vmem:[#allocation5 + $0x28] sm:$0xff] }
 0x112   :  { %v1324_v13 = vor.u32 %v1554_v6, %v1323_v23  ;;  %v1576_v52 = vld [vmem:[#allocation5 + $0x60] sm:$0xff]  ;;  %v1594_v63 = vld [vmem:[#allocation5 + $0xf0] sm:$0xff]  ;;  %v1573_v3 = vld [vmem:[#allocation5 + $0x48] sm:$0xff] }
 0x113   :  { %v481_v20 = vmul.f32 %v1679_v1, %v480_v14  ;;  %v1328_v14 = vor.u32 %v1552_v7, %v1325_v8  ;;  %v1585_v23 = vld [vmem:[#allocation5 + $0xa8] sm:$0xff] }
 0x114   :  { %v1593_v6 = vld [vmem:[#allocation5 + $0xe8] sm:$0xff] }
 0x115   :  { %v482_v33 = vadd.f32 %v1679_v1, %v481_v20  ;;  %679 = vmatpush.bf16.msra.mxu2 %v1340_v2  ;;  %693 = vmatpush.bf16.msrb.mxu3 %v1328_v14  ;;  %v1333_v20 = vld [vmem:[#allocation2 + $0x38] sm:$0xf0]  ;;  %v1584_v14 = vld [vmem:[#allocation5 + $0xa0] sm:$0xff] }
 0x116   :  { %v1336_v21 = vor.u32 %v1553_v19, %v1333_v20  ;;  %v1580_v19 = vld [vmem:[#allocation5 + $0x80] sm:$0xff] }
 0x117   :  { %v486_v60 = vsel %vm485_vm14, %v1679_v1, %v482_v33  ;;  %v534_v1 = vmul.f32 %v461_v45, %v2065_v9  ;;  %v1307_v9 = vld [vmem:[#allocation2] sm:$0xf]  ;;  %v1320_v33 = vor.u32 %v1549_v26, %v1317_v28 }
 0x118   :  { %v491_v46 = vsel %vm488_vm0, %v490_v40, %v486_v60  ;;  %v1568_v45 = vld [vmem:[#allocation5 + $0x20] sm:$0xff] }
 0x119   :  { %v536_v51 = vmul.f32 %v491_v46, %v2082_v44  ;;  %v533_v44 = vmul.f32 %v446_v61, %v2054_v54  ;;  %680 = vmatpush.bf16.msra.mxu2 %v1324_v13  ;;  %v539_v54 = vld [vmem:[%s2192_s2] sm:$0xf]  ;;  %694 = vmatpush.bf16.msrb.mxu3 %v1312_v30  ;;  %v1579_v46 = vld [vmem:[#allocation5 + $0x78] sm:$0xff] }
 0x11a   :  { %v1595_v61 = vld [vmem:[#allocation5 + $0xf8] sm:$0xff]  ;;  %v1572_v13 = vld [vmem:[#allocation5 + $0x40] sm:$0xff] }
 0x11b   :  { %v546_v48 = vpack.c.bf16 %v536_v51, %v535_v50  ;;  %v545_v10 = vpack.c.bf16 %v534_v1, %v533_v44  ;;  %v1577_v50 = vld [vmem:[#allocation5 + $0x68] sm:$0xff]  ;;  %v561_v1 = vld [vmem:[#allocation7] sm:$0xf] }
 0x11c   :  { %v1565_v51 = vld [vmem:[#allocation5 + $0x8] sm:$0xff]  ;;  %v583_v2 = vperm.slane %v561_v1, 1  ;;  %v584_v56 = vperm.slane %v561_v1, 2 }
 0x11d   :  { %549 = vmatpush.bf16.msra.mxu1 %v546_v48  ;;  %v582_v48 = vperm.slane %v561_v1, 0 }
 0x121   :  { %550 = vmatpush.bf16.msra.mxu1 %v545_v10 }
 0x125   :  { %551 = vmatpush.bf16.msra.mxu1 %v544_v41  ;;  %v1557_v41 = vld [vmem:[#allocation2 + $0x4c] sm:$0xf] }
 0x126   :  { %v1352_v15 = vor.u32 %v1557_v41, %v1349_v17  ;;  %v1589_v41 = vld [vmem:[#allocation5 + $0xc8] sm:$0xff] }
 0x129   :  { %552 = vmatpush.bf16.msra.mxu1 %v543_v0  ;;  %v1308_v0 = vor.u32 %v1550_v4, %v1307_v9 }
 0x12b   :  { %681 = vmatpush.bf16.msra.mxu2 %v1308_v0  ;;  %v1591_v0 = vld [vmem:[#allocation5 + $0xd8] sm:$0xff] }
 0x12d   :  { %553 = vmatpush.bf16.msra.mxu1 %v542_v38  ;;  %v1365_v38 = vld [vmem:[#allocation2 + $0x78] sm:$0xf0] }
 0x131   :  { %554 = vmatpush.bf16.msra.mxu1 %v541_v42  ;;  %v1364_v42 = vor.u32 %v1563_v31, %v1363_v32  ;;  %v1582_v32 = vld [vmem:[#allocation5 + $0x90] sm:$0xff] }
 0x132   :  { %v1590_v31 = vld [vmem:[#allocation5 + $0xd0] sm:$0xff] }
 0x133   :  { %704 = vmatpush.bf16.msrb.mxu2 %v1364_v42 }
 0x135   :  { %555 = vmatpush.bf16.msra.mxu1 %v540_v58  ;;  %v1368_v58 = vor.u32 %v1561_v35, %v1365_v38 }
 0x137   :  { %717 = vmatpush.bf16.msra.mxu3 %v1368_v58  ;;  %705 = vmatpush.bf16.msrb.mxu2 %v1348_v27  ;;  %v585_v58 = vperm.slane %v561_v1, 3  ;;  %v1581_v27 = vld [vmem:[#allocation5 + $0x88] sm:$0xff] }
 0x138   :  { %556 = vmatmul.bf16.vlgmr.msra.gmra.mxu1 %v539_v54  ;;  %v1592_v54 = vld [vmem:[#allocation5 + $0xe0] sm:$0xff] }
 0x139   :  { %1069 = vmatpush.bf16.msrb.mxu1 %v1571_v36 }
 0x13b   :  { %718 = vmatpush.bf16.msra.mxu3 %v1352_v15  ;;  %706 = vmatpush.bf16.msrb.mxu2 %v1332_v11  ;;  %v1588_v11 = vld [vmem:[#allocation5 + $0xc0] sm:$0xff] }
 0x13d   :  { %1070 = vmatpush.bf16.msrb.mxu1 %v1570_v34 }
 0x13f   :  { %719 = vmatpush.bf16.msra.mxu3 %v1336_v21  ;;  %707 = vmatpush.bf16.msrb.mxu2 %v1316_v29 }
 0x141   :  { %1071 = vmatpush.bf16.msrb.mxu1 %v1569_v37 }
 0x143   :  { %720 = vmatpush.bf16.msra.mxu3 %v1320_v33 }
 0x145   :  { %1072 = vmatpush.bf16.msrb.mxu1 %v1568_v45 }
 0x149   :  { %1073 = vmatpush.bf16.msrb.mxu1 %v1567_v24 }
 0x14d   :  { %1074 = vmatpush.bf16.msrb.mxu1 %v1566_v12 }
 0x151   :  { %1075 = vmatpush.bf16.msrb.mxu1 %v1565_v51 }
 0x155   :  { %1076 = vmatpush.bf16.msrb.mxu1 %v1564_v53 }
 0x159   :  { %1108 = vmatpush.bf16.msra.mxu1 %v1595_v61 }
 0x15d   :  { %1109 = vmatpush.bf16.msra.mxu1 %v1594_v63 }
 0x161   :  { %1110 = vmatpush.bf16.msra.mxu1 %v1593_v6 }
 0x165   :  { %1111 = vmatpush.bf16.msra.mxu1 %v1592_v54 }
 0x169   :  { %1112 = vmatpush.bf16.msra.mxu1 %v1591_v0 }
 0x16d   :  { %1113 = vmatpush.bf16.msra.mxu1 %v1590_v31 }
 0x171   :  { %1114 = vmatpush.bf16.msra.mxu1 %v1589_v41 }
 0x175   :  { %1115 = vmatpush.bf16.msra.mxu1 %v1588_v11  ;;  %v1599_v11 = vld [vmem:[%s2195_s5 + $0x18] sm:$0xff] }
 0x1b5   :  { %v557_v40 = vpop.f32.mrf.mxu1 }
 0x1b6   :  { %v564_v16 = vpack.c.bf16 %v557_v40, %v557_v40 }
 0x1b8   :  { %1369 = vmatmul.msk.bf16.vlgmr.msra.gmra.mxu2 %vm670_vm1, %v564_v16  ;;  %1370 = vmatmul.msk.bf16.vlgmr.msrb.gmra.mxu3 %vm670_vm1, %v564_v16 }
 0x1b9   :  { %1082 = vmatpush.bf16.msra.mxu2 %v1579_v46  ;;  %1095 = vmatpush.bf16.msrb.mxu3 %v1587_v59 }
 0x1bd   :  { %v559_v60 = vpop.f32.mrf.mxu1  ;;  %1083 = vmatpush.bf16.msra.mxu2 %v1578_v49  ;;  %1096 = vmatpush.bf16.msrb.mxu3 %v1586_v62 }
 0x1c1   :  { %1084 = vmatpush.bf16.msra.mxu2 %v1577_v50  ;;  %1097 = vmatpush.bf16.msrb.mxu3 %v1585_v23 }
 0x1c5   :  { %1085 = vmatpush.bf16.msra.mxu2 %v1576_v52  ;;  %1098 = vmatpush.bf16.msrb.mxu3 %v1584_v14 }
 0x1c8   :  { %1371 = vmatmul.msk.bf16.vlgmr.msrb.gmra.mxu2 %vm670_vm1, %v564_v16  ;;  %1372 = vmatmul.msk.bf16.vlgmr.msra.gmra.mxu3 %vm670_vm1, %v564_v16 }
 0x1c9   :  { %1086 = vmatpush.bf16.msra.mxu2 %v1575_v57  ;;  %1099 = vmatpush.bf16.msrb.mxu3 %v1583_v5 }
 0x1cd   :  { %1087 = vmatpush.bf16.msra.mxu2 %v1574_v47  ;;  %1100 = vmatpush.bf16.msrb.mxu3 %v1582_v32 }
 0x1d1   :  { %1088 = vmatpush.bf16.msra.mxu2 %v1573_v3  ;;  %1101 = vmatpush.bf16.msrb.mxu3 %v1581_v27  ;;  %v1603_v27 = vld [vmem:[%s2195_s5 + $0x38] sm:$0xff] }
 0x1d5   :  { %1089 = vmatpush.bf16.msra.mxu2 %v1572_v13  ;;  %1102 = vmatpush.bf16.msrb.mxu3 %v1580_v19  ;;  %v1600_v19 = vld [vmem:[%s2195_s5 + $0x20] sm:$0xff] }
 0x1d9   :  { %1209 = vmatpush.bf16.msrb.mxu2 %v1603_v27 }
 0x23b   :  { %v683_v44 = vpop.f32.mrf.mxu2  ;;  %v696_v7 = vpop.f32.mrf.mxu3 }
 0x23c   :  { %v2147_v8 = vadd.f32 %v683_v44, %v582_v48  ;;  %v2149_v10 = vadd.f32 %v696_v7, %v583_v2 }
 0x23e   :  { %v1373_v9 = vmul.f32 -1.442695, %v2147_v8  ;;  %v1374_v4 = vmul.f32 -1.442695, %v2149_v10 }
 0x240   :  { %1680 = vpow2.f32 %v1373_v9 }
 0x241   :  { %1682 = vpow2.f32 %v1374_v4 }
 0x243   :  { %v685_v43 = vpop.f32.mrf.mxu2  ;;  %v698_v30 = vpop.f32.mrf.mxu3 }
 0x246   :  { %v1681_v35 = vpop.eup %1680 }
 0x247   :  { %v1683_v42 = vpop.eup %1682  ;;  %v738_v38 = vadd.f32 1.0, %v1681_v35 }
 0x248   :  { %v739_v55 = vadd.f32 1.0, %v1683_v42 }
 0x249   :  { %1684 = vrcp.f32 %v738_v38  ;;  %v753_v33 = vand.u32 2147483648, %v738_v38  ;;  %v751_v16 = vand.u32 2147483647, %v738_v38  ;;  %vm747_vm4 = vweird.f32 %v738_v38 }
 0x24a   :  { %1686 = vrcp.f32 %v739_v55  ;;  %v768_v60 = vand.u32 2147483648, %v739_v55  ;;  %v766_v46 = vand.u32 2147483647, %v739_v55  ;;  %vm762_vm6 = vweird.f32 %v739_v55 }
 0x24b   :  { %v709_v17 = vpop.f32.mrf.mxu2  ;;  %v722_v15 = vpop.f32.mrf.mxu3  ;;  %v754_v50 = vor.u32 1.1754944e-38, %v753_v33  ;;  %vm752_vm7 = vcmp.eq.f32.partialorder %v751_v16, 8.507059e+37 }
 0x24c   :  { %v2153_v39 = vadd.f32 %v709_v17, %v584_v56  ;;  %v2155_v18 = vadd.f32 %v722_v15, %v585_v58  ;;  %v769_v57 = vor.u32 1.1754944e-38, %v768_v60  ;;  %vm767_vm9 = vcmp.eq.f32.partialorder %v766_v46, 8.507059e+37  ;;  %v1602_v17 = vld [vmem:[%s2195_s5 + $0x30] sm:$0xff]  ;;  %v1601_v15 = vld [vmem:[%s2195_s5 + $0x28] sm:$0xff] }
 0x24d   :  { %1210 = vmatpush.bf16.msrb.mxu2 %v1602_v17 }
 0x24e   :  { %v1375_v20 = vmul.f32 -1.442695, %v2153_v39  ;;  %v1376_v21 = vmul.f32 -1.442695, %v2155_v18 }
 0x24f   :  { %v1685_v22 = vpop.eup %1684 }
 0x250   :  { %v1687_v25 = vpop.eup %1686  ;;  %v743_v26 = vmul.f32 %v1685_v22, %v738_v38  ;;  %1688 = vpow2.f32 %v1375_v20  ;;  %vm748_vm2 = vweird.f32 %v1685_v22  ;;  %v1614_v20 = vld [vmem:[#allocation7 + $0x4] ss:$0 sm:$0xff] }
 0x251   :  { %v758_v28 = vmul.f32 %v1687_v25, %v739_v55  ;;  %1690 = vpow2.f32 %v1376_v21  ;;  %vm763_vm3 = vweird.f32 %v1687_v25  ;;  %vm749_vm5 = vmor %vm747_vm4, %vm748_vm2  ;;  %1211 = vmatpush.bf16.msrb.mxu2 %v1601_v15 }
 0x252   :  { %v744_v29 = vsub.f32 1.0, %v743_v26  ;;  %vm764_vm8 = vmor %vm762_vm6, %vm763_vm3 }
 0x253   :  { %v759_v36 = vsub.f32 1.0, %v758_v28  ;;  %v711_v34 = vpop.f32.mrf.mxu2  ;;  %v724_v37 = vpop.f32.mrf.mxu3 }
 0x254   :  { %v745_v40 = vmul.f32 %v1685_v22, %v744_v29  ;;  %v1597_v29 = vld [vmem:[%s2195_s5 + $0x8] sm:$0xff]  ;;  %v1596_v37 = vld [vmem:[%s2195_s5] sm:$0xff] }
 0x255   :  { %v760_v45 = vmul.f32 %v1687_v25, %v759_v36  ;;  %1212 = vmatpush.bf16.msrb.mxu2 %v1600_v19 }
 0x256   :  { %v1689_v24 = vpop.eup %1688  ;;  %v746_v49 = vadd.f32 %v1685_v22, %v745_v40 }
 0x257   :  { %v1691_v12 = vpop.eup %1690  ;;  %v761_v51 = vadd.f32 %v1687_v25, %v760_v45  ;;  %v740_v52 = vadd.f32 1.0, %v1689_v24 }
 0x258   :  { %v750_v53 = vsel %vm749_vm5, %v1685_v22, %v746_v49  ;;  %v741_v59 = vadd.f32 1.0, %v1691_v12  ;;  %v1598_v22 = vld [vmem:[%s2195_s5 + $0x10] sm:$0xff]  ;;  %s1809_s5 = smov [#allocation8]  }
 0x259   :  { %v755_v61 = vsel %vm752_vm7, %v754_v50, %v750_v53  ;;  %v765_v47 = vsel %vm764_vm8, %v1687_v25, %v761_v51  ;;  %1692 = vrcp.f32 %v740_v52  ;;  %v783_v13 = vand.u32 2147483648, %v740_v52  ;;  %1213 = vmatpush.bf16.msrb.mxu2 %v1599_v11  ;;  %s1228_s26 = sshll.u32 %s1809_s5, 4  ;;  %s1229_s26 = int_to_ptr.vmem [resolvable:$true] %s1228_s26 }
 0x25a   :  { %v802_v62 = vmul.f32 %v755_v61, %v2147_v8  ;;  %v770_v63 = vsel %vm767_vm9, %v769_v57, %v765_v47  ;;  %1694 = vrcp.f32 %v741_v59  ;;  %v781_v54 = vand.u32 2147483647, %v740_v52 }
 0x25b   :  { %v803_v1 = vmul.f32 %v770_v63, %v2149_v10  ;;  %vm777_vm11 = vweird.f32 %v740_v52  ;;  %v798_v8 = vand.u32 2147483648, %v741_v59  ;;  %v796_v10 = vand.u32 2147483647, %v741_v59  ;;  %v1615_v63 = vld [vmem:[#allocation7 + $0x5] ss:$0 sm:$0xff] }
 0x25c   :  { %v806_v48 = vpack.c.bf16 %v802_v62, %v802_v62  ;;  %v784_v0 = vor.u32 1.1754944e-38, %v783_v13  ;;  %vm782_vm14 = vcmp.eq.f32.partialorder %v781_v54, 8.507059e+37  ;;  %vm792_vm15 = vweird.f32 %v741_v59 }
 0x25d   :  { %v807_v2 = vpack.c.bf16 %v803_v1, %v803_v1  ;;  %v799_v31 = vor.u32 1.1754944e-38, %v798_v8  ;;  %vm797_vm1 = vcmp.eq.f32.partialorder %v796_v10, 8.507059e+37  ;;  %1214 = vmatpush.bf16.msrb.mxu2 %v1598_v22 }
 0x25e   :  { %1077 = vmatmul.bf16.vlgmr.msrb.gmra.mxu1 %v806_v48 }
 0x25f   :  { %v1693_v3 = vpop.eup %1692  ;;  %1090 = vmatmul.bf16.vlgmr.msra.gmra.mxu2 %v807_v2 }
 0x260   :  { %v773_v23 = vmul.f32 %v1693_v3, %v740_v52  ;;  %v1695_v6 = vpop.eup %1694  ;;  %vm778_vm10 = vweird.f32 %v1693_v3 }
 0x261   :  { %v788_v7 = vmul.f32 %v1695_v6, %v741_v59  ;;  %vm793_vm12 = vweird.f32 %v1695_v6  ;;  %vm779_vm13 = vmor %vm777_vm11, %vm778_vm10  ;;  %1215 = vmatpush.bf16.msrb.mxu2 %v1597_v29 }
 0x262   :  { %v774_v44 = vsub.f32 1.0, %v773_v23  ;;  %vm794_vm0 = vmor %vm792_vm15, %vm793_vm12 }
 0x263   :  { %v789_v9 = vsub.f32 1.0, %v788_v7 }
 0x264   :  { %v775_v14 = vmul.f32 %v1693_v3, %v774_v44 }
 0x265   :  { %v790_v5 = vmul.f32 %v1695_v6, %v789_v9  ;;  %1216 = vmatpush.bf16.msrb.mxu2 %v1596_v37 }
 0x266   :  { %v776_v4 = vadd.f32 %v1693_v3, %v775_v14 }
 0x267   :  { %v791_v30 = vadd.f32 %v1695_v6, %v790_v5 }
 0x268   :  { %v780_v43 = vsel %vm779_vm13, %v1693_v3, %v776_v4 }
 0x269   :  { %v785_v32 = vsel %vm782_vm14, %v784_v0, %v780_v43  ;;  %v795_v42 = vsel %vm794_vm0, %v1695_v6, %v791_v30 }
 0x26a   :  { %v804_v35 = vmul.f32 %v785_v32, %v2153_v39  ;;  %v800_v38 = vsel %vm797_vm1, %v799_v31, %v795_v42 }
 0x26b   :  { %v805_v56 = vmul.f32 %v800_v38, %v2155_v18 }
 0x26c   :  { %v808_v55 = vpack.c.bf16 %v804_v35, %v804_v35 }
 0x26d   :  { %v809_v58 = vpack.c.bf16 %v805_v56, %v805_v56 }
 0x26e   :  { %1103 = vmatmul.bf16.vlgmr.msrb.gmra.mxu3 %v808_v55 }
 0x26f   :  { %1116 = vmatmul.bf16.vlgmr.msra.gmra.mxu1 %v809_v58 }
 0x2db   :  { %v1078_v41 = vpop.f32.mrf.mxu1 }
 0x2dc   :  { %v1079_v26 = vadd.f32 %v1614_v20, %v1078_v41 }
 0x2e2   :  { %v1091_v39 = vpop.f32.mrf.mxu2 }
 0x2e3   :  { %v1080_v18 = vpop.f32.mrf.mxu1  ;;  %v1092_v28 = vadd.f32 %v1091_v39, %v1079_v26 }
 0x2ea   :  { %v1093_v21 = vpop.f32.mrf.mxu2 }
 0x2ec   :  { %v1117_v25 = vpop.f32.mrf.mxu1 }
 0x2f1   :  { %v1104_v33 = vpop.f32.mrf.mxu3 }
 0x2f2   :  { %v1105_v36 = vadd.f32 %v1104_v33, %v1092_v28 }
 0x2f4   :  { %v1118_v34 = vadd.f32 %v1117_v25, %v1105_v36  ;;  %v1119_v40 = vpop.f32.mrf.mxu1 }
 0x2f6   :  { %v1505_v16 = vmul.f32 -1.442695, %v1118_v34 }
 0x2f8   :  { %1696 = vpow2.f32 %v1505_v16 }
 0x2f9   :  { %v1106_v60 = vpop.f32.mrf.mxu3 }
 0x2fe   :  { %v1697_v45 = vpop.eup %1696 }
 0x2ff   :  { %v1124_v46 = vadd.f32 1.0, %v1697_v45 }
 0x301   :  { %1698 = vrcp.f32 %v1124_v46  ;;  %v1136_v50 = vand.u32 2147483648, %v1124_v46  ;;  %v1134_v52 = vand.u32 2147483647, %v1124_v46  ;;  %vm1130_vm3 = vweird.f32 %v1124_v46 }
 0x303   :  { %v1137_v57 = vor.u32 1.1754944e-38, %v1136_v50  ;;  %vm1135_vm5 = vcmp.eq.f32.partialorder %v1134_v52, 8.507059e+37 }
 0x307   :  { %v1699_v24 = vpop.eup %1698 }
 0x308   :  { %v1126_v49 = vmul.f32 %v1699_v24, %v1124_v46  ;;  %vm1131_vm2 = vweird.f32 %v1699_v24 }
 0x309   :  { %vm1132_vm4 = vmor %vm1130_vm3, %vm1131_vm2 }
 0x30a   :  { %v1127_v12 = vsub.f32 1.0, %v1126_v49 }
 0x30c   :  { %v1128_v51 = vmul.f32 %v1699_v24, %v1127_v12 }
 0x30e   :  { %v1129_v53 = vadd.f32 %v1699_v24, %v1128_v51 }
 0x310   :  { %v1133_v59 = vsel %vm1132_vm4, %v1699_v24, %v1129_v53 }
 0x311   :  { %v1138_v61 = vsel %vm1135_vm5, %v1137_v57, %v1133_v59 }
 0x312   :  { %v1140_v47 = vmul.f32 %v1138_v61, %v1118_v34 }
 0x314   :  { %v1141_v62 = vpack.c.bf16 %v1140_v47, %v1140_v47 }
 0x316   :  { %1217 = vmatmul.bf16.vlgmr.msrb.gmra.mxu2 %v1141_v62 }
 0x399   :  { %v1218_v1 = vpop.f32.mrf.mxu2 }
 0x39a   :  { %v1219_v48 = vadd.f32 %v1615_v63, %v1218_v1 }
 0x39c   :  { %1222 = vst [vmem:[#allocation8] sm:$0xff] %v1219_v48 }
 0x39d   :  { %1233 = dma.vmem_to_hbm [thread:$0]  %s1229_s26, 128, %s1231_s28, [#allocation4]  }
 0x3a1   :  { %v1220_v2 = vpop.f32.mrf.mxu2 }
 0x3a2   :  { %1800 = dma.done.wait [#allocation4], 128  }
 0x3a3   :  { %1801 = vsyncadd [#allocation4], 4294967168 }
 0x3a4   :  { %1238 = vsyncpa [#allocation3], 1 }
 0x3a5   :  { %1239 = vsyncpa [#allocation6], 1 }
 0x3a6   :  { %1240 = vsyncpa [#allocation4], 1 }

</bundles_post_ra>
